<compile_context>
chip_gen: v7x
topology: tpu7x:2x2x1
jax: 0.10.0
libtpu: 0.0.40
codegen_flags: <defaults>
</compile_context>

<pallas_src>
import jax
import jax.numpy as jnp
from jax.experimental import pallas as pl
from jax.experimental.pallas import tpu as pltpu

# ---------------------------------------------------------------------------
# Model hyper-parameters (small, consistent with the Decoder's __init__)
# ---------------------------------------------------------------------------
OUTPUT_DIM = 16      # vocab size (embedding rows == fc output dim)
EMB_SIZE   = 16
HIDDEN     = 32
LAYERS     = 2       # decoderLayers
DROPOUT_P  = 0.1     # TODO(synk): dropout is identity here (inference / eval semantics)
BATCH      = 2
SEQ        = 8


# ---------------------------------------------------------------------------
# Pallas kernel: ReLU(emb) -> 2-layer tanh RNN recurrence -> Linear -> LogSoftmax
# ---------------------------------------------------------------------------
def decoder_kernel(x_ref,        # (T, B, E)  embedded tokens, time-major (relu applied inside)
                   h0_ref,       # (L, B, H)  initial hidden state
                   w_ih0_ref,    # (E, H)     layer-0 input->hidden (pre-transposed)
                   w_hh0_ref,    # (H, H)     layer-0 hidden->hidden
                   b0_ref,       # (1, H)     layer-0 combined bias (b_ih + b_hh)
                   w_ih1_ref,    # (H, H)     layer-1 input->hidden
                   w_hh1_ref,    # (H, H)     layer-1 hidden->hidden
                   b1_ref,       # (1, H)     layer-1 combined bias
                   fcw_ref,      # (H, V)     fc weight (transposed)
                   fcb_ref,      # (1, V)     fc bias
                   logp_ref,     # out: (B, T, V) log-softmax(fc(rnn_out)), batch-first
                   hout_ref,     # out: (L, B, H) final hidden state
                   hseq_ref):    # VMEM scratch (B, T, H): per-step layer-1 outputs
    T, B, _ = x_ref.shape
    H = h0_ref.shape[2]
    V = fcw_ref.shape[1]

    # ---- hoist all loop-invariant loads and bias broadcasts out of the loop ----
    w_ih0 = w_ih0_ref[...]
    w_hh0 = w_hh0_ref[...]
    w_ih1 = w_ih1_ref[...]
    w_hh1 = w_hh1_ref[...]
    b0 = jnp.broadcast_to(b0_ref[...], (B, H))
    b1 = jnp.broadcast_to(b1_ref[...], (B, H))

    # F.relu(embedding(...)) applied once on the whole slab (hoisted out of the loop)
    x_all = jnp.maximum(x_ref[...], 0.0)                      # (T, B, E)

    # Hidden state lives in vregs across the recurrence (no VMEM round-trips).
    h0 = h0_ref[0]                                            # (B, H)
    h1 = h0_ref[1]                                            # (B, H)

    # T is static & tiny -> fully unrolled loop; the dependent chain per step is
    # only 2 matmul stages (h0@W_hh0 -> tanh -> h0_new@W_ih1 -> tanh); the
    # x_t@W_ih0 and h1@W_hh1 matmuls are independent and overlap with it.
    for t in range(T):
        x_t = x_all[t]                                                        # (B, E)
        pre0 = (jnp.dot(x_t, w_ih0, preferred_element_type=jnp.float32)
                + jnp.dot(h0, w_hh0, preferred_element_type=jnp.float32)
                + b0)
        h0 = jnp.tanh(pre0)                                                   # layer-0 new hidden
        pre1 = (jnp.dot(h0, w_ih1, preferred_element_type=jnp.float32)
                + jnp.dot(h1, w_hh1, preferred_element_type=jnp.float32)
                + b1)
        h1 = jnp.tanh(pre1)                                                   # layer-1 new hidden
        hseq_ref[:, t, :] = h1          # collect output (static index; off the critical chain)

    # Final hidden state written once after the loop.
    hout_ref[0] = h0
    hout_ref[1] = h1

    # ---- FC + log-softmax hoisted out of the recurrence: one matmul, one slab store ----
    h_seq = hseq_ref[...].reshape(B * T, H)                   # layout-trivial reshape
    logits = (jnp.dot(h_seq, fcw_ref[...], preferred_element_type=jnp.float32)
              + fcb_ref[...])                                 # (B*T, V)
    m = jnp.max(logits, axis=-1, keepdims=True)
    shifted = logits - m
    lse = jnp.log(jnp.sum(jnp.exp(shifted), axis=-1, keepdims=True))
    logp_ref[...] = (shifted - lse).reshape(B, T, V)          # single batch-first store


# ---------------------------------------------------------------------------
# Wrapper (glue): embedding gather + layout transpose + pallas_call
# ---------------------------------------------------------------------------
def decoder_forward(tokens, h0, params):
    """tokens: (B, T) int32, h0: (L, B, H) f32 -> (logp (B, T, V), h_out (L, B, H))."""
    emb = params["embedding"][tokens]                # (B, T, E) embedding gather (glue)
    x_tbe = jnp.transpose(emb, (1, 0, 2))            # (T, B, E) time-major for the recurrence
    T, B, _ = x_tbe.shape
    L, _, H = h0.shape
    V = params["fc_w"].shape[1]

    vmem = pl.BlockSpec(memory_space=pltpu.MemorySpace.VMEM)

    logp, h_out = pl.pallas_call(
        decoder_kernel,
        out_shape=(
            jax.ShapeDtypeStruct((B, T, V), jnp.float32),   # batch-first: no output transpose
            jax.ShapeDtypeStruct((L, B, H), jnp.float32),
        ),
        in_specs=[vmem] * 10,
        out_specs=(vmem, vmem),
        scratch_shapes=[pltpu.VMEM((B, T, H), jnp.float32)],
    )(
        x_tbe, h0,
        params["w_ih0"], params["w_hh0"], params["b0"],
        params["w_ih1"], params["w_hh1"], params["b1"],
        params["fc_w"], params["fc_b"],
    )
    return logp, h_out


# ---------------------------------------------------------------------------
# Pure-JAX reference (mirrors the PyTorch forward, eval mode)
# ---------------------------------------------------------------------------
def decoder_reference(tokens, h0, params):
    emb = params["embedding"][tokens]                # (B, T, E)
    x = jax.nn.relu(emb)
    B, T, _ = x.shape
    h = [h0[0], h0[1]]
    outs = []
    for t in range(T):
        xt = x[:, t, :]
        h[0] = jnp.tanh(xt @ params["w_ih0"] + h[0] @ params["w_hh0"] + params["b0"])
        h[1] = jnp.tanh(h[0] @ params["w_ih1"] + h[1] @ params["w_hh1"] + params["b1"])
        outs.append(h[1])
    out = jnp.stack(outs, axis=1)                    # (B, T, H)
    logits = out @ params["fc_w"] + params["fc_b"]   # (B, T, V)
    logp = jax.nn.log_softmax(logits, axis=2)
    return logp, jnp.stack(h, axis=0)


# ---------------------------------------------------------------------------
# Deterministic parameter init + driver
# ---------------------------------------------------------------------------
def init_params(key):
    ks = jax.random.split(key, 8)
    s = 0.1
    return {
        # nn.Embedding(outputDim, embSize)
        "embedding": jax.random.normal(ks[0], (OUTPUT_DIM, EMB_SIZE), jnp.float32),
        # nn.RNN layer 0 (weights stored pre-transposed: (in, out))
        "w_ih0": s * jax.random.normal(ks[1], (EMB_SIZE, HIDDEN), jnp.float32),
        "w_hh0": s * jax.random.normal(ks[2], (HIDDEN, HIDDEN), jnp.float32),
        "b0":    s * jax.random.normal(ks[3], (1, HIDDEN), jnp.float32),
        # nn.RNN layer 1
        "w_ih1": s * jax.random.normal(ks[4], (HIDDEN, HIDDEN), jnp.float32),
        "w_hh1": s * jax.random.normal(ks[5], (HIDDEN, HIDDEN), jnp.float32),
        "b1":    s * jax.random.normal(ks[6], (1, HIDDEN), jnp.float32),
        # nn.Linear(hidden, outputDim)
        "fc_w": s * jax.random.normal(ks[7], (HIDDEN, OUTPUT_DIM), jnp.float32),
        "fc_b": jnp.zeros((1, OUTPUT_DIM), jnp.float32),
    }


if __name__ == "__main__":
    key = jax.random.PRNGKey(0)
    k_tok, k_h0, k_par = jax.random.split(key, 3)

    params = init_params(k_par)
    tokens = jax.random.randint(k_tok, (BATCH, SEQ), 0, OUTPUT_DIM, dtype=jnp.int32)
    h0 = 0.1 * jax.random.normal(k_h0, (LAYERS, BATCH, HIDDEN), jnp.float32)

    logp, h_out = decoder_forward(tokens, h0, params)
    logp = jax.block_until_ready(logp)
    h_out = jax.block_until_ready(h_out)

    ref_logp, ref_h = decoder_reference(tokens, h0, params)
    assert logp.shape == (BATCH, SEQ, OUTPUT_DIM)
    assert h_out.shape == (LAYERS, BATCH, HIDDEN)
    assert jnp.allclose(logp, ref_logp, atol=1e-4, rtol=1e-4)
    assert jnp.allclose(h_out, ref_h, atol=1e-4, rtol=1e-4)

    print("KERNEL_OK")
</pallas_src>

<mosaic_0001>
module attributes {stable_mosaic.version = 11 : i64} {
  func.func @decoder_kernel(%arg0: memref<8x2x16xf32, #tpu.memory_space<vmem>>, %arg1: memref<2x2x32xf32, #tpu.memory_space<vmem>>, %arg2: memref<16x32xf32, #tpu.memory_space<vmem>>, %arg3: memref<32x32xf32, #tpu.memory_space<vmem>>, %arg4: memref<1x32xf32, #tpu.memory_space<vmem>>, %arg5: memref<32x32xf32, #tpu.memory_space<vmem>>, %arg6: memref<32x32xf32, #tpu.memory_space<vmem>>, %arg7: memref<1x32xf32, #tpu.memory_space<vmem>>, %arg8: memref<32x16xf32, #tpu.memory_space<vmem>>, %arg9: memref<1x16xf32, #tpu.memory_space<vmem>>, %arg10: memref<2x8x16xf32, #tpu.memory_space<vmem>>, %arg11: memref<2x2x32xf32, #tpu.memory_space<vmem>>, %arg12: memref<2x8x32xf32, #tpu.memory_space<vmem>>) attributes {dimension_semantics = [], scalar_prefetch = 0 : i64, scratch_operands = 1 : i64, tpu.core_type = #tpu.core_type<tc>} {
    %c0 = arith.constant 0 : index
    %c0_0 = arith.constant 0 : index
    %0 = vector.load %arg2[%c0, %c0_0] : memref<16x32xf32, #tpu.memory_space<vmem>>, vector<16x32xf32>
    %c0_1 = arith.constant 0 : index
    %c0_2 = arith.constant 0 : index
    %1 = vector.load %arg3[%c0_1, %c0_2] : memref<32x32xf32, #tpu.memory_space<vmem>>, vector<32x32xf32>
    %c0_3 = arith.constant 0 : index
    %c0_4 = arith.constant 0 : index
    %2 = vector.load %arg5[%c0_3, %c0_4] : memref<32x32xf32, #tpu.memory_space<vmem>>, vector<32x32xf32>
    %c0_5 = arith.constant 0 : index
    %c0_6 = arith.constant 0 : index
    %3 = vector.load %arg6[%c0_5, %c0_6] : memref<32x32xf32, #tpu.memory_space<vmem>>, vector<32x32xf32>
    %c0_7 = arith.constant 0 : index
    %c0_8 = arith.constant 0 : index
    %4 = vector.load %arg4[%c0_7, %c0_8] : memref<1x32xf32, #tpu.memory_space<vmem>>, vector<1x32xf32>
    %5 = vector.shape_cast %4 : vector<1x32xf32> to vector<1x32xf32>
    %6 = vector.broadcast %5 : vector<1x32xf32> to vector<2x32xf32>
    %c0_9 = arith.constant 0 : index
    %c0_10 = arith.constant 0 : index
    %7 = vector.load %arg7[%c0_9, %c0_10] : memref<1x32xf32, #tpu.memory_space<vmem>>, vector<1x32xf32>
    %8 = vector.shape_cast %7 : vector<1x32xf32> to vector<1x32xf32>
    %9 = vector.broadcast %8 : vector<1x32xf32> to vector<2x32xf32>
    %c0_11 = arith.constant 0 : index
    %c0_12 = arith.constant 0 : index
    %c0_13 = arith.constant 0 : index
    %10 = vector.load %arg0[%c0_11, %c0_12, %c0_13] : memref<8x2x16xf32, #tpu.memory_space<vmem>>, vector<8x2x16xf32>
    %cst = arith.constant 0.000000e+00 : f32
    %11 = vector.broadcast %cst : f32 to vector<8x2x16xf32>
    %12 = arith.maximumf %10, %11 : vector<8x2x16xf32>
    %c0_14 = arith.constant 0 : index
    %c0_15 = arith.constant 0 : index
    %c0_16 = arith.constant 0 : index
    %13 = vector.load %arg1[%c0_14, %c0_15, %c0_16] : memref<2x2x32xf32, #tpu.memory_space<vmem>>, vector<1x2x32xf32>
    %14 = vector.shape_cast %13 : vector<1x2x32xf32> to vector<2x32xf32>
    %c1 = arith.constant 1 : index
    %c0_17 = arith.constant 0 : index
    %c0_18 = arith.constant 0 : index
    %15 = vector.load %arg1[%c1, %c0_17, %c0_18] : memref<2x2x32xf32, #tpu.memory_space<vmem>>, vector<1x2x32xf32>
    %16 = vector.shape_cast %15 : vector<1x2x32xf32> to vector<2x32xf32>
    %17 = vector.extract_strided_slice %12 {offsets = [0, 0, 0], sizes = [1, 2, 16], strides = [1, 1, 1]} : vector<8x2x16xf32> to vector<1x2x16xf32>
    %18 = vector.shape_cast %17 : vector<1x2x16xf32> to vector<2x16xf32>
    %cst_19 = arith.constant dense<0.000000e+00> : vector<2x32xf32>
    %19 = tpu.matmul %18, %0, %cst_19 {dimension_numbers = #tpu.dot_dimension_numbers<[1], [0], [0], [1], [0, 0, 1, 1], [], []>} : vector<2x16xf32>, vector<16x32xf32>, vector<2x32xf32> -> vector<2x32xf32>
    %cst_20 = arith.constant dense<0.000000e+00> : vector<2x32xf32>
    %20 = tpu.matmul %14, %1, %cst_20 {dimension_numbers = #tpu.dot_dimension_numbers<[1], [0], [0], [1], [0, 0, 1, 1], [], []>} : vector<2x32xf32>, vector<32x32xf32>, vector<2x32xf32> -> vector<2x32xf32>
    %21 = arith.addf %19, %20 : vector<2x32xf32>
    %22 = arith.addf %21, %6 : vector<2x32xf32>
    %23 = math.tanh %22 : vector<2x32xf32>
    %cst_21 = arith.constant dense<0.000000e+00> : vector<2x32xf32>
    %24 = tpu.matmul %23, %2, %cst_21 {dimension_numbers = #tpu.dot_dimension_numbers<[1], [0], [0], [1], [0, 0, 1, 1], [], []>} : vector<2x32xf32>, vector<32x32xf32>, vector<2x32xf32> -> vector<2x32xf32>
    %cst_22 = arith.constant dense<0.000000e+00> : vector<2x32xf32>
    %25 = tpu.matmul %16, %3, %cst_22 {dimension_numbers = #tpu.dot_dimension_numbers<[1], [0], [0], [1], [0, 0, 1, 1], [], []>} : vector<2x32xf32>, vector<32x32xf32>, vector<2x32xf32> -> vector<2x32xf32>
    %26 = arith.addf %24, %25 : vector<2x32xf32>
    %27 = arith.addf %26, %9 : vector<2x32xf32>
    %28 = math.tanh %27 : vector<2x32xf32>
    %c0_23 = arith.constant 0 : index
    %c0_24 = arith.constant 0 : index
    %c0_25 = arith.constant 0 : index
    %29 = vector.load %arg12[%c0_23, %c0_24, %c0_25] : memref<2x8x32xf32, #tpu.memory_space<vmem>>, vector<2x1x32xf32>
    %30 = vector.shape_cast %29 : vector<2x1x32xf32> to vector<2x32xf32>
    %31 = vector.shape_cast %28 : vector<2x32xf32> to vector<2x1x32xf32>
    tpu.vector_store %arg12[%c0_23, %c0_24, %c0_25], %31 {strides = array<i32>} : memref<2x8x32xf32, #tpu.memory_space<vmem>>, vector<2x1x32xf32>,
    %32 = vector.extract_strided_slice %12 {offsets = [1, 0, 0], sizes = [1, 2, 16], strides = [1, 1, 1]} : vector<8x2x16xf32> to vector<1x2x16xf32>
    %33 = vector.shape_cast %32 : vector<1x2x16xf32> to vector<2x16xf32>
    %cst_26 = arith.constant dense<0.000000e+00> : vector<2x32xf32>
    %34 = tpu.matmul %33, %0, %cst_26 {dimension_numbers = #tpu.dot_dimension_numbers<[1], [0], [0], [1], [0, 0, 1, 1], [], []>} : vector<2x16xf32>, vector<16x32xf32>, vector<2x32xf32> -> vector<2x32xf32>
    %cst_27 = arith.constant dense<0.000000e+00> : vector<2x32xf32>
    %35 = tpu.matmul %23, %1, %cst_27 {dimension_numbers = #tpu.dot_dimension_numbers<[1], [0], [0], [1], [0, 0, 1, 1], [], []>} : vector<2x32xf32>, vector<32x32xf32>, vector<2x32xf32> -> vector<2x32xf32>
    %36 = arith.addf %34, %35 : vector<2x32xf32>
    %37 = arith.addf %36, %6 : vector<2x32xf32>
    %38 = math.tanh %37 : vector<2x32xf32>
    %cst_28 = arith.constant dense<0.000000e+00> : vector<2x32xf32>
    %39 = tpu.matmul %38, %2, %cst_28 {dimension_numbers = #tpu.dot_dimension_numbers<[1], [0], [0], [1], [0, 0, 1, 1], [], []>} : vector<2x32xf32>, vector<32x32xf32>, vector<2x32xf32> -> vector<2x32xf32>
    %cst_29 = arith.constant dense<0.000000e+00> : vector<2x32xf32>
    %40 = tpu.matmul %28, %3, %cst_29 {dimension_numbers = #tpu.dot_dimension_numbers<[1], [0], [0], [1], [0, 0, 1, 1], [], []>} : vector<2x32xf32>, vector<32x32xf32>, vector<2x32xf32> -> vector<2x32xf32>
    %41 = arith.addf %39, %40 : vector<2x32xf32>
    %42 = arith.addf %41, %9 : vector<2x32xf32>
    %43 = math.tanh %42 : vector<2x32xf32>
    %c0_30 = arith.constant 0 : index
    %c1_31 = arith.constant 1 : index
    %c0_32 = arith.constant 0 : index
    %44 = vector.load %arg12[%c0_30, %c1_31, %c0_32] : memref<2x8x32xf32, #tpu.memory_space<vmem>>, vector<2x1x32xf32>
    %45 = vector.shape_cast %44 : vector<2x1x32xf32> to vector<2x32xf32>
    %46 = vector.shape_cast %43 : vector<2x32xf32> to vector<2x1x32xf32>
    tpu.vector_store %arg12[%c0_30, %c1_31, %c0_32], %46 {strides = array<i32>} : memref<2x8x32xf32, #tpu.memory_space<vmem>>, vector<2x1x32xf32>,
    %47 = vector.extract_strided_slice %12 {offsets = [2, 0, 0], sizes = [1, 2, 16], strides = [1, 1, 1]} : vector<8x2x16xf32> to vector<1x2x16xf32>
    %48 = vector.shape_cast %47 : vector<1x2x16xf32> to vector<2x16xf32>
    %cst_33 = arith.constant dense<0.000000e+00> : vector<2x32xf32>
    %49 = tpu.matmul %48, %0, %cst_33 {dimension_numbers = #tpu.dot_dimension_numbers<[1], [0], [0], [1], [0, 0, 1, 1], [], []>} : vector<2x16xf32>, vector<16x32xf32>, vector<2x32xf32> -> vector<2x32xf32>
    %cst_34 = arith.constant dense<0.000000e+00> : vector<2x32xf32>
    %50 = tpu.matmul %38, %1, %cst_34 {dimension_numbers = #tpu.dot_dimension_numbers<[1], [0], [0], [1], [0, 0, 1, 1], [], []>} : vector<2x32xf32>, vector<32x32xf32>, vector<2x32xf32> -> vector<2x32xf32>
    %51 = arith.addf %49, %50 : vector<2x32xf32>
    %52 = arith.addf %51, %6 : vector<2x32xf32>
    %53 = math.tanh %52 : vector<2x32xf32>
    %cst_35 = arith.constant dense<0.000000e+00> : vector<2x32xf32>
    %54 = tpu.matmul %53, %2, %cst_35 {dimension_numbers = #tpu.dot_dimension_numbers<[1], [0], [0], [1], [0, 0, 1, 1], [], []>} : vector<2x32xf32>, vector<32x32xf32>, vector<2x32xf32> -> vector<2x32xf32>
    %cst_36 = arith.constant dense<0.000000e+00> : vector<2x32xf32>
    %55 = tpu.matmul %43, %3, %cst_36 {dimension_numbers = #tpu.dot_dimension_numbers<[1], [0], [0], [1], [0, 0, 1, 1], [], []>} : vector<2x32xf32>, vector<32x32xf32>, vector<2x32xf32> -> vector<2x32xf32>
    %56 = arith.addf %54, %55 : vector<2x32xf32>
    %57 = arith.addf %56, %9 : vector<2x32xf32>
    %58 = math.tanh %57 : vector<2x32xf32>
    %c0_37 = arith.constant 0 : index
    %c2 = arith.constant 2 : index
    %c0_38 = arith.constant 0 : index
    %59 = vector.load %arg12[%c0_37, %c2, %c0_38] : memref<2x8x32xf32, #tpu.memory_space<vmem>>, vector<2x1x32xf32>
    %60 = vector.shape_cast %59 : vector<2x1x32xf32> to vector<2x32xf32>
    %61 = vector.shape_cast %58 : vector<2x32xf32> to vector<2x1x32xf32>
    tpu.vector_store %arg12[%c0_37, %c2, %c0_38], %61 {strides = array<i32>} : memref<2x8x32xf32, #tpu.memory_space<vmem>>, vector<2x1x32xf32>,
    %62 = vector.extract_strided_slice %12 {offsets = [3, 0, 0], sizes = [1, 2, 16], strides = [1, 1, 1]} : vector<8x2x16xf32> to vector<1x2x16xf32>
    %63 = vector.shape_cast %62 : vector<1x2x16xf32> to vector<2x16xf32>
    %cst_39 = arith.constant dense<0.000000e+00> : vector<2x32xf32>
    %64 = tpu.matmul %63, %0, %cst_39 {dimension_numbers = #tpu.dot_dimension_numbers<[1], [0], [0], [1], [0, 0, 1, 1], [], []>} : vector<2x16xf32>, vector<16x32xf32>, vector<2x32xf32> -> vector<2x32xf32>
    %cst_40 = arith.constant dense<0.000000e+00> : vector<2x32xf32>
    %65 = tpu.matmul %53, %1, %cst_40 {dimension_numbers = #tpu.dot_dimension_numbers<[1], [0], [0], [1], [0, 0, 1, 1], [], []>} : vector<2x32xf32>, vector<32x32xf32>, vector<2x32xf32> -> vector<2x32xf32>
    %66 = arith.addf %64, %65 : vector<2x32xf32>
    %67 = arith.addf %66, %6 : vector<2x32xf32>
    %68 = math.tanh %67 : vector<2x32xf32>
    %cst_41 = arith.constant dense<0.000000e+00> : vector<2x32xf32>
    %69 = tpu.matmul %68, %2, %cst_41 {dimension_numbers = #tpu.dot_dimension_numbers<[1], [0], [0], [1], [0, 0, 1, 1], [], []>} : vector<2x32xf32>, vector<32x32xf32>, vector<2x32xf32> -> vector<2x32xf32>
    %cst_42 = arith.constant dense<0.000000e+00> : vector<2x32xf32>
    %70 = tpu.matmul %58, %3, %cst_42 {dimension_numbers = #tpu.dot_dimension_numbers<[1], [0], [0], [1], [0, 0, 1, 1], [], []>} : vector<2x32xf32>, vector<32x32xf32>, vector<2x32xf32> -> vector<2x32xf32>
    %71 = arith.addf %69, %70 : vector<2x32xf32>
    %72 = arith.addf %71, %9 : vector<2x32xf32>
    %73 = math.tanh %72 : vector<2x32xf32>
    %c0_43 = arith.constant 0 : index
    %c3 = arith.constant 3 : index
    %c0_44 = arith.constant 0 : index
    %74 = vector.load %arg12[%c0_43, %c3, %c0_44] : memref<2x8x32xf32, #tpu.memory_space<vmem>>, vector<2x1x32xf32>
    %75 = vector.shape_cast %74 : vector<2x1x32xf32> to vector<2x32xf32>
    %76 = vector.shape_cast %73 : vector<2x32xf32> to vector<2x1x32xf32>
    tpu.vector_store %arg12[%c0_43, %c3, %c0_44], %76 {strides = array<i32>} : memref<2x8x32xf32, #tpu.memory_space<vmem>>, vector<2x1x32xf32>,
    %77 = vector.extract_strided_slice %12 {offsets = [4, 0, 0], sizes = [1, 2, 16], strides = [1, 1, 1]} : vector<8x2x16xf32> to vector<1x2x16xf32>
    %78 = vector.shape_cast %77 : vector<1x2x16xf32> to vector<2x16xf32>
    %cst_45 = arith.constant dense<0.000000e+00> : vector<2x32xf32>
    %79 = tpu.matmul %78, %0, %cst_45 {dimension_numbers = #tpu.dot_dimension_numbers<[1], [0], [0], [1], [0, 0, 1, 1], [], []>} : vector<2x16xf32>, vector<16x32xf32>, vector<2x32xf32> -> vector<2x32xf32>
    %cst_46 = arith.constant dense<0.000000e+00> : vector<2x32xf32>
    %80 = tpu.matmul %68, %1, %cst_46 {dimension_numbers = #tpu.dot_dimension_numbers<[1], [0], [0], [1], [0, 0, 1, 1], [], []>} : vector<2x32xf32>, vector<32x32xf32>, vector<2x32xf32> -> vector<2x32xf32>
    %81 = arith.addf %79, %80 : vector<2x32xf32>
    %82 = arith.addf %81, %6 : vector<2x32xf32>
    %83 = math.tanh %82 : vector<2x32xf32>
    %cst_47 = arith.constant dense<0.000000e+00> : vector<2x32xf32>
    %84 = tpu.matmul %83, %2, %cst_47 {dimension_numbers = #tpu.dot_dimension_numbers<[1], [0], [0], [1], [0, 0, 1, 1], [], []>} : vector<2x32xf32>, vector<32x32xf32>, vector<2x32xf32> -> vector<2x32xf32>
    %cst_48 = arith.constant dense<0.000000e+00> : vector<2x32xf32>
    %85 = tpu.matmul %73, %3, %cst_48 {dimension_numbers = #tpu.dot_dimension_numbers<[1], [0], [0], [1], [0, 0, 1, 1], [], []>} : vector<2x32xf32>, vector<32x32xf32>, vector<2x32xf32> -> vector<2x32xf32>
    %86 = arith.addf %84, %85 : vector<2x32xf32>
    %87 = arith.addf %86, %9 : vector<2x32xf32>
    %88 = math.tanh %87 : vector<2x32xf32>
    %c0_49 = arith.constant 0 : index
    %c4 = arith.constant 4 : index
    %c0_50 = arith.constant 0 : index
    %89 = vector.load %arg12[%c0_49, %c4, %c0_50] : memref<2x8x32xf32, #tpu.memory_space<vmem>>, vector<2x1x32xf32>
    %90 = vector.shape_cast %89 : vector<2x1x32xf32> to vector<2x32xf32>
    %91 = vector.shape_cast %88 : vector<2x32xf32> to vector<2x1x32xf32>
    tpu.vector_store %arg12[%c0_49, %c4, %c0_50], %91 {strides = array<i32>} : memref<2x8x32xf32, #tpu.memory_space<vmem>>, vector<2x1x32xf32>,
    %92 = vector.extract_strided_slice %12 {offsets = [5, 0, 0], sizes = [1, 2, 16], strides = [1, 1, 1]} : vector<8x2x16xf32> to vector<1x2x16xf32>
    %93 = vector.shape_cast %92 : vector<1x2x16xf32> to vector<2x16xf32>
    %cst_51 = arith.constant dense<0.000000e+00> : vector<2x32xf32>
    %94 = tpu.matmul %93, %0, %cst_51 {dimension_numbers = #tpu.dot_dimension_numbers<[1], [0], [0], [1], [0, 0, 1, 1], [], []>} : vector<2x16xf32>, vector<16x32xf32>, vector<2x32xf32> -> vector<2x32xf32>
    %cst_52 = arith.constant dense<0.000000e+00> : vector<2x32xf32>
    %95 = tpu.matmul %83, %1, %cst_52 {dimension_numbers = #tpu.dot_dimension_numbers<[1], [0], [0], [1], [0, 0, 1, 1], [], []>} : vector<2x32xf32>, vector<32x32xf32>, vector<2x32xf32> -> vector<2x32xf32>
    %96 = arith.addf %94, %95 : vector<2x32xf32>
    %97 = arith.addf %96, %6 : vector<2x32xf32>
    %98 = math.tanh %97 : vector<2x32xf32>
    %cst_53 = arith.constant dense<0.000000e+00> : vector<2x32xf32>
    %99 = tpu.matmul %98, %2, %cst_53 {dimension_numbers = #tpu.dot_dimension_numbers<[1], [0], [0], [1], [0, 0, 1, 1], [], []>} : vector<2x32xf32>, vector<32x32xf32>, vector<2x32xf32> -> vector<2x32xf32>
    %cst_54 = arith.constant dense<0.000000e+00> : vector<2x32xf32>
    %100 = tpu.matmul %88, %3, %cst_54 {dimension_numbers = #tpu.dot_dimension_numbers<[1], [0], [0], [1], [0, 0, 1, 1], [], []>} : vector<2x32xf32>, vector<32x32xf32>, vector<2x32xf32> -> vector<2x32xf32>
    %101 = arith.addf %99, %100 : vector<2x32xf32>
    %102 = arith.addf %101, %9 : vector<2x32xf32>
    %103 = math.tanh %102 : vector<2x32xf32>
    %c0_55 = arith.constant 0 : index
    %c5 = arith.constant 5 : index
    %c0_56 = arith.constant 0 : index
    %104 = vector.load %arg12[%c0_55, %c5, %c0_56] : memref<2x8x32xf32, #tpu.memory_space<vmem>>, vector<2x1x32xf32>
    %105 = vector.shape_cast %104 : vector<2x1x32xf32> to vector<2x32xf32>
    %106 = vector.shape_cast %103 : vector<2x32xf32> to vector<2x1x32xf32>
    tpu.vector_store %arg12[%c0_55, %c5, %c0_56], %106 {strides = array<i32>} : memref<2x8x32xf32, #tpu.memory_space<vmem>>, vector<2x1x32xf32>,
    %107 = vector.extract_strided_slice %12 {offsets = [6, 0, 0], sizes = [1, 2, 16], strides = [1, 1, 1]} : vector<8x2x16xf32> to vector<1x2x16xf32>
    %108 = vector.shape_cast %107 : vector<1x2x16xf32> to vector<2x16xf32>
    %cst_57 = arith.constant dense<0.000000e+00> : vector<2x32xf32>
    %109 = tpu.matmul %108, %0, %cst_57 {dimension_numbers = #tpu.dot_dimension_numbers<[1], [0], [0], [1], [0, 0, 1, 1], [], []>} : vector<2x16xf32>, vector<16x32xf32>, vector<2x32xf32> -> vector<2x32xf32>
    %cst_58 = arith.constant dense<0.000000e+00> : vector<2x32xf32>
    %110 = tpu.matmul %98, %1, %cst_58 {dimension_numbers = #tpu.dot_dimension_numbers<[1], [0], [0], [1], [0, 0, 1, 1], [], []>} : vector<2x32xf32>, vector<32x32xf32>, vector<2x32xf32> -> vector<2x32xf32>
    %111 = arith.addf %109, %110 : vector<2x32xf32>
    %112 = arith.addf %111, %6 : vector<2x32xf32>
    %113 = math.tanh %112 : vector<2x32xf32>
    %cst_59 = arith.constant dense<0.000000e+00> : vector<2x32xf32>
    %114 = tpu.matmul %113, %2, %cst_59 {dimension_numbers = #tpu.dot_dimension_numbers<[1], [0], [0], [1], [0, 0, 1, 1], [], []>} : vector<2x32xf32>, vector<32x32xf32>, vector<2x32xf32> -> vector<2x32xf32>
    %cst_60 = arith.constant dense<0.000000e+00> : vector<2x32xf32>
    %115 = tpu.matmul %103, %3, %cst_60 {dimension_numbers = #tpu.dot_dimension_numbers<[1], [0], [0], [1], [0, 0, 1, 1], [], []>} : vector<2x32xf32>, vector<32x32xf32>, vector<2x32xf32> -> vector<2x32xf32>
    %116 = arith.addf %114, %115 : vector<2x32xf32>
    %117 = arith.addf %116, %9 : vector<2x32xf32>
    %118 = math.tanh %117 : vector<2x32xf32>
    %c0_61 = arith.constant 0 : index
    %c6 = arith.constant 6 : index
    %c0_62 = arith.constant 0 : index
    %119 = vector.load %arg12[%c0_61, %c6, %c0_62] : memref<2x8x32xf32, #tpu.memory_space<vmem>>, vector<2x1x32xf32>
    %120 = vector.shape_cast %119 : vector<2x1x32xf32> to vector<2x32xf32>
    %121 = vector.shape_cast %118 : vector<2x32xf32> to vector<2x1x32xf32>
    tpu.vector_store %arg12[%c0_61, %c6, %c0_62], %121 {strides = array<i32>} : memref<2x8x32xf32, #tpu.memory_space<vmem>>, vector<2x1x32xf32>,
    %122 = vector.extract_strided_slice %12 {offsets = [7, 0, 0], sizes = [1, 2, 16], strides = [1, 1, 1]} : vector<8x2x16xf32> to vector<1x2x16xf32>
    %123 = vector.shape_cast %122 : vector<1x2x16xf32> to vector<2x16xf32>
    %cst_63 = arith.constant dense<0.000000e+00> : vector<2x32xf32>
    %124 = tpu.matmul %123, %0, %cst_63 {dimension_numbers = #tpu.dot_dimension_numbers<[1], [0], [0], [1], [0, 0, 1, 1], [], []>} : vector<2x16xf32>, vector<16x32xf32>, vector<2x32xf32> -> vector<2x32xf32>
    %cst_64 = arith.constant dense<0.000000e+00> : vector<2x32xf32>
    %125 = tpu.matmul %113, %1, %cst_64 {dimension_numbers = #tpu.dot_dimension_numbers<[1], [0], [0], [1], [0, 0, 1, 1], [], []>} : vector<2x32xf32>, vector<32x32xf32>, vector<2x32xf32> -> vector<2x32xf32>
    %126 = arith.addf %124, %125 : vector<2x32xf32>
    %127 = arith.addf %126, %6 : vector<2x32xf32>
    %128 = math.tanh %127 : vector<2x32xf32>
    %cst_65 = arith.constant dense<0.000000e+00> : vector<2x32xf32>
    %129 = tpu.matmul %128, %2, %cst_65 {dimension_numbers = #tpu.dot_dimension_numbers<[1], [0], [0], [1], [0, 0, 1, 1], [], []>} : vector<2x32xf32>, vector<32x32xf32>, vector<2x32xf32> -> vector<2x32xf32>
    %cst_66 = arith.constant dense<0.000000e+00> : vector<2x32xf32>
    %130 = tpu.matmul %118, %3, %cst_66 {dimension_numbers = #tpu.dot_dimension_numbers<[1], [0], [0], [1], [0, 0, 1, 1], [], []>} : vector<2x32xf32>, vector<32x32xf32>, vector<2x32xf32> -> vector<2x32xf32>
    %131 = arith.addf %129, %130 : vector<2x32xf32>
    %132 = arith.addf %131, %9 : vector<2x32xf32>
    %133 = math.tanh %132 : vector<2x32xf32>
    %c0_67 = arith.constant 0 : index
    %c7 = arith.constant 7 : index
    %c0_68 = arith.constant 0 : index
    %134 = vector.load %arg12[%c0_67, %c7, %c0_68] : memref<2x8x32xf32, #tpu.memory_space<vmem>>, vector<2x1x32xf32>
    %135 = vector.shape_cast %134 : vector<2x1x32xf32> to vector<2x32xf32>
    %136 = vector.shape_cast %133 : vector<2x32xf32> to vector<2x1x32xf32>
    tpu.vector_store %arg12[%c0_67, %c7, %c0_68], %136 {strides = array<i32>} : memref<2x8x32xf32, #tpu.memory_space<vmem>>, vector<2x1x32xf32>,
    %c0_69 = arith.constant 0 : index
    %c0_70 = arith.constant 0 : index
    %c0_71 = arith.constant 0 : index
    %137 = vector.load %arg11[%c0_69, %c0_70, %c0_71] : memref<2x2x32xf32, #tpu.memory_space<vmem>>, vector<1x2x32xf32>
    %138 = vector.shape_cast %137 : vector<1x2x32xf32> to vector<2x32xf32>
    %139 = vector.shape_cast %128 : vector<2x32xf32> to vector<1x2x32xf32>
    tpu.vector_store %arg11[%c0_69, %c0_70, %c0_71], %139 {strides = array<i32>} : memref<2x2x32xf32, #tpu.memory_space<vmem>>, vector<1x2x32xf32>,
    %c1_72 = arith.constant 1 : index
    %c0_73 = arith.constant 0 : index
    %c0_74 = arith.constant 0 : index
    %140 = vector.load %arg11[%c1_72, %c0_73, %c0_74] : memref<2x2x32xf32, #tpu.memory_space<vmem>>, vector<1x2x32xf32>
    %141 = vector.shape_cast %140 : vector<1x2x32xf32> to vector<2x32xf32>
    %142 = vector.shape_cast %133 : vector<2x32xf32> to vector<1x2x32xf32>
    tpu.vector_store %arg11[%c1_72, %c0_73, %c0_74], %142 {strides = array<i32>} : memref<2x2x32xf32, #tpu.memory_space<vmem>>, vector<1x2x32xf32>,
    %c0_75 = arith.constant 0 : index
    %c0_76 = arith.constant 0 : index
    %c0_77 = arith.constant 0 : index
    %143 = vector.load %arg12[%c0_75, %c0_76, %c0_77] : memref<2x8x32xf32, #tpu.memory_space<vmem>>, vector<2x8x32xf32>
    %144 = vector.shape_cast %143 : vector<2x8x32xf32> to vector<16x32xf32>
    %c0_78 = arith.constant 0 : index
    %c0_79 = arith.constant 0 : index
    %145 = vector.load %arg8[%c0_78, %c0_79] : memref<32x16xf32, #tpu.memory_space<vmem>>, vector<32x16xf32>
    %cst_80 = arith.constant dense<0.000000e+00> : vector<16x16xf32>
    %146 = tpu.matmul %144, %145, %cst_80 {dimension_numbers = #tpu.dot_dimension_numbers<[1], [0], [0], [1], [0, 0, 1, 1], [], []>} : vector<16x32xf32>, vector<32x16xf32>, vector<16x16xf32> -> vector<16x16xf32>
    %c0_81 = arith.constant 0 : index
    %c0_82 = arith.constant 0 : index
    %147 = vector.load %arg9[%c0_81, %c0_82] : memref<1x16xf32, #tpu.memory_space<vmem>>, vector<1x16xf32>
    %148 = vector.broadcast %147 : vector<1x16xf32> to vector<16x16xf32>
    %149 = arith.addf %146, %148 : vector<16x16xf32>
    %cst_83 = arith.constant dense<0xFF800000> : vector<16xf32>
    %150 = vector.multi_reduction <maximumf>, %149, %cst_83 [1] : vector<16x16xf32> to vector<16xf32>
    %151 = vector.shape_cast %150 : vector<16xf32> to vector<16x1xf32>
    %152 = vector.broadcast %151 : vector<16x1xf32> to vector<16x16xf32>
    %153 = arith.subf %149, %152 : vector<16x16xf32>
    %154 = math.exp %153 : vector<16x16xf32>
    %cst_84 = arith.constant dense<0.000000e+00> : vector<16xf32>
    %155 = vector.multi_reduction <add>, %154, %cst_84 [1] : vector<16x16xf32> to vector<16xf32>
    %156 = vector.shape_cast %155 : vector<16xf32> to vector<16x1xf32>
    %157 = math.log %156 : vector<16x1xf32>
    %158 = vector.broadcast %157 : vector<16x1xf32> to vector<16x16xf32>
    %159 = arith.subf %153, %158 : vector<16x16xf32>
    %160 = vector.shape_cast %159 : vector<16x16xf32> to vector<2x8x16xf32>
    %c0_85 = arith.constant 0 : index
    %c0_86 = arith.constant 0 : index
    %c0_87 = arith.constant 0 : index
    %161 = vector.load %arg10[%c0_85, %c0_86, %c0_87] : memref<2x8x16xf32, #tpu.memory_space<vmem>>, vector<2x8x16xf32>
    tpu.vector_store %arg10[%c0_85, %c0_86, %c0_87], %160 {strides = array<i32>} : memref<2x8x16xf32, #tpu.memory_space<vmem>>, vector<2x8x16xf32>,
    return
  }
}

</mosaic_0001>

<bundles_post_ra>
// kernel: tpu_custom_call.1
= control target key start
LH: loop header
LB: loop body
LE: loop exit
PB: predicated region body
PF: predicated region fallthrough
CT: control target
= control target key end

     0   :  { %17 = vsyncpa [#allocation4], 0  ;;  %s4259_s0 = inlined_call_operand.hbm [shape: f32[8,2,16], index: 0, kind: input, shape index: {}]   ;;  %s4260_s1 = inlined_call_operand.hbm [shape: f32[2,2,32], index: 1, kind: input, shape index: {}]   ;;  %s4261_s2 = inlined_call_operand.hbm [shape: f32[16,32], index: 2, kind: input, shape index: {}]   ;;  %s4262_s3 = inlined_call_operand.vmem [shape: f32[32,32], index: 3, kind: input, shape index: {}]   ;;  %s4263_s4 = inlined_call_operand.vmem [shape: f32[1,32], index: 4, kind: input, shape index: {}]   ;;  %s4264_s5 = inlined_call_operand.vmem [shape: f32[32,32], index: 5, kind: input, shape index: {}]   ;;  %s4265_s6 = inlined_call_operand.hbm [shape: f32[32,32], index: 6, kind: input, shape index: {}]   ;;  %s4266_s7 = inlined_call_operand.vmem [shape: f32[1,32], index: 7, kind: input, shape index: {}]   ;;  %s4267_s8 = inlined_call_operand.vmem [shape: f32[32,16], index: 8, kind: input, shape index: {}]   ;;  %s4268_s9 = inlined_call_operand.vmem [shape: f32[1,16], index: 9, kind: input, shape index: {}]   ;;  %s4269_s10 = inlined_call_operand.hbm [shape: f32[2,8,16], index: 10, kind: output, shape index: {0}]   ;;  %s4270_s11 = inlined_call_operand.hbm [shape: f32[2,2,32], index: 11, kind: output, shape index: {1}]  }
   0x1   :  { %18 = vsyncpa [#allocation7], 0 }
   0x2   :  { %19 = vsyncpa [#allocation10], 0 }
   0x3   :  { %20 = vsyncpa [#allocation5], 0 }
   0x4   :  { %21 = vsyncpa [#allocation13], 0  ;;  %s3749_s17 = smov [#allocation6]   ;;  %s3750_s19 = smov [#allocation3]  }
   0x5   :  { %s39_s18 = sshll.u32 %s3749_s17, 4  ;;  %s27_s20 = sshll.u32 %s3750_s19, 4  ;;  %s40_s18 = int_to_ptr.vmem [resolvable:$true] %s39_s18  ;;  %s3823_s20 = int_to_ptr.vmem [resolvable:$true] %s27_s20 }
   0x6   :  { %s3607_s23 = scalar_lea.hbm %s4260_s1, 64 }
   0x7   :  { %p3608_p0 = scmp.ne.s32.totalorder %s4260_s1, %s3607_s23  ;;  %p3611_p1 = scmp.lt.u32.totalorder %s3607_s23, %s4260_s1 }
   0x9   :  { %p3613_p2 = pnand %p3611_p1, %p3608_p0 }
   0xb   :  { %3616 = shalt.err (!%p3613_p2)
}
   0xc   :  { %s3617_s28 = scalar_lea.vmem %s40_s18, 64  ;;  %p3622_p4 = scmp.lt.s32.totalorder %s40_s18, %s40_s18 }
   0xd   :  { %p3618_p3 = scmp.ne.s32.totalorder %s40_s18, %s3617_s28  ;;  %p3623_p5 = scmp.lt.s32.totalorder %s3617_s28, %s3617_s28 }
   0xf   :  { %p3624_p6 = por %p3623_p5, %p3622_p4 }
  0x11   :  { %p3625_p7 = pnand %p3624_p6, %p3618_p3 }
  0x13   :  { %3628 = shalt.err (!%p3625_p7)
}
  0x14   :  { %s3751_s29 = smov 32   ;;  %s3752_s30 = smov 2  }
  0x15   :  { %45 = dma.hbm_to_vmem [thread:$0]  %s4260_s1, 64, %s40_s18, [#allocation7], %s3751_s29, %s3751_s29, %s3752_s30  }
  0x16   :  { %s3629_s16 = scalar_lea.hbm %s4259_s0, 256 }
  0x17   :  { %p3630_p8 = scmp.ne.s32.totalorder %s4259_s0, %s3629_s16  ;;  %p3633_p9 = scmp.lt.u32.totalorder %s3629_s16, %s4259_s0 }
  0x19   :  { %p3635_p10 = pnand %p3633_p9, %p3630_p8 }
  0x1b   :  { %3638 = shalt.err (!%p3635_p10)
}
  0x1c   :  { %s3639_s23 = scalar_lea.vmem %s3823_s20, 256  ;;  %p3644_p12 = scmp.lt.s32.totalorder %s3823_s20, %s3823_s20 }
  0x1d   :  { %p3640_p11 = scmp.ne.s32.totalorder %s3823_s20, %s3639_s23  ;;  %p3645_p13 = scmp.lt.s32.totalorder %s3639_s23, %s3639_s23 }
  0x1f   :  { %p3646_p0 = por %p3645_p13, %p3644_p12 }
  0x21   :  { %p3647_p1 = pnand %p3646_p0, %p3640_p11 }
  0x23   :  { %3650 = shalt.err (!%p3647_p1)
}
  0x24   :  { %33 = dma.hbm_to_vmem [thread:$0]  %s4259_s0, 256, %s3823_s20, [#allocation4], %s3751_s29, %s3751_s29, %s3752_s30  }
  0x25   :  { %s3753_s24 = smov [#allocation8]   ;;  %s3651_s28 = scalar_lea.hbm %s4261_s2, 256 }
  0x26   :  { %s51_s25 = sshll.u32 %s3753_s24, 4  ;;  %p3652_p2 = scmp.ne.s32.totalorder %s4261_s2, %s3651_s28  ;;  %s52_s25 = int_to_ptr.vmem [resolvable:$true] %s51_s25 }
  0x27   :  { %p3655_p3 = scmp.lt.u32.totalorder %s3651_s28, %s4261_s2 }
  0x29   :  { %p3657_p4 = pnand %p3655_p3, %p3652_p2 }
  0x2b   :  { %3660 = shalt.err (!%p3657_p4)
}
  0x2c   :  { %s3661_s16 = scalar_lea.vmem %s52_s25, 256  ;;  %p3666_p6 = scmp.lt.s32.totalorder %s52_s25, %s52_s25 }
  0x2d   :  { %p3662_p5 = scmp.ne.s32.totalorder %s52_s25, %s3661_s16  ;;  %p3667_p7 = scmp.lt.s32.totalorder %s3661_s16, %s3661_s16 }
  0x2f   :  { %p3668_p8 = por %p3667_p7, %p3666_p6 }
  0x31   :  { %p3669_p9 = pnand %p3668_p8, %p3662_p5 }
  0x33   :  { %3672 = shalt.err (!%p3669_p9)
}
  0x34   :  { %s3754_s0 = smov 128   ;;  %s3755_s20 = smov 8  }
  0x35   :  { %57 = dma.hbm_to_vmem [thread:$0]  %s4261_s2, 256, %s52_s25, [#allocation7], %s3754_s0, %s3754_s0, %s3755_s20  }
  0x36   :  { %s3756_s21 = smov [#allocation9]   ;;  %s3673_s18 = scalar_lea.hbm %s4265_s6, 512 }
  0x37   :  { %s69_s22 = sshll.u32 %s3756_s21, 4  ;;  %p3674_p10 = scmp.ne.s32.totalorder %s4265_s6, %s3673_s18  ;;  %s70_s22 = int_to_ptr.vmem [resolvable:$true] %s69_s22 }
  0x38   :  { %p3677_p11 = scmp.lt.u32.totalorder %s3673_s18, %s4265_s6 }
  0x3a   :  { %p3679_p12 = pnand %p3677_p11, %p3674_p10 }
  0x3c   :  { %3682 = shalt.err (!%p3679_p12)
}
  0x3d   :  { %s3683_s12 = scalar_lea.vmem %s70_s22, 512  ;;  %p3688_p0 = scmp.lt.s32.totalorder %s70_s22, %s70_s22 }
  0x3e   :  { %p3684_p13 = scmp.ne.s32.totalorder %s70_s22, %s3683_s12  ;;  %p3689_p1 = scmp.lt.s32.totalorder %s3683_s12, %s3683_s12 }
  0x40   :  { %p3690_p2 = por %p3689_p1, %p3688_p0 }
  0x42   :  { %p3691_p3 = pnand %p3690_p2, %p3684_p13 }
  0x44   :  { %3694 = shalt.err (!%p3691_p3)
}
  0x45   :  { %75 = dma.hbm_to_vmem [thread:$0]  %s4265_s6, 512, %s70_s22, [#allocation10], %s3754_s0, %s3754_s0, %s3755_s20  }
  0x46   :  { %3739 = dma.done.wait [#allocation4], 256  }
  0x47   :  { %3740 = vsyncadd [#allocation4], 4294967040 }
  0x48   :  { %3741 = dma.done.wait [#allocation7], 320  }
  0x49   :  { %3742 = vsyncadd [#allocation7], 4294966976 }
  0x4a   :  { %3743 = dma.done.wait [#allocation10], 512  }
  0x4b   :  { %3744 = vsyncadd [#allocation10], 4294966784  ;;  %v3757_v0 = vmov 0.0|0.0   ;;  %vm3758_vm0 = vmmov 0   ;;  %v3759_v1 = vmov 0.0   ;;  %v96_v2 = vld [vmem:[%s4262_s3] sm:$0xff]  ;;  %v443_v48 = vlaneseq }
  0x4c   :  { %3377 = vmatprep.subr.bf16.mxu0 %v3757_v0  ;;  %3383 = vmatprep.subr.bf16.mxu1 %v3757_v0  ;;  %v97_v3 = vld [vmem:[%s4262_s3 + $0x8] sm:$0xff]  ;;  %v98_v7 = vld [vmem:[%s4262_s3 + $0x10] sm:$0xff]  ;;  %v99_v8 = vld [vmem:[%s4262_s3 + $0x18] sm:$0xff]  ;;  %vm215_vm1 = vcmask 130048   ;;  %vm141_vm2 = vcmask 261120   ;;  %vm464_vm3 = vcmask 253952  }
  0x4d   :  { %3061 = vmatprep.mubr.msk.f32.mxu1 %vm3758_vm0, %v3759_v1  ;;  %3054 = vmatprep.mubr.msk.f32.mxu0 %vm3758_vm0, %v3759_v1  ;;  %v94_v4 = vld [vmem:[#allocation8] sm:$0xff]  ;;  %v3902_v5 = vpack.c.bf16 %v97_v3, %v96_v2  ;;  %v95_v6 = vld [vmem:[#allocation8 + $0x8] sm:$0xff]  ;;  %v3913_v11 = vpack.c.bf16 %v99_v8, %v98_v7  ;;  %v138_v13 = vld [vmem:[#allocation6] sm:$0x3]  ;;  %v3760_v46 = vmov 1966171168  }
  0x4e   :  { %v3910_v9 = vpack.c.bf16 %v95_v6, %v94_v4  ;;  %v122_v10 = vld [vmem:[#allocation3] sm:$0x3]  ;;  %v104_v14 = vld [vmem:[#allocation9] sm:$0xff]  ;;  %v105_v15 = vld [vmem:[#allocation9 + $0x8] sm:$0xff]  ;;  %v441_v47 = vunpack.c.l.s4 %v3760_v46  ;;  %v444_v54 = vshrl.u32 %v443_v48, 7  ;;  %vm2700_vm4 = vcmask 254976  }
  0x4f   :  { %3379 = vmatpush3.bf16.msra.mxu0 %v3902_v5  ;;  %v130_v12 = vmax.f32 %v122_v10, 0.0  ;;  %v3926_v16 = vpack.c.bf16 %v105_v15, %v104_v14  ;;  %v106_v17 = vld [vmem:[#allocation9 + $0x10] sm:$0xff]  ;;  %v107_v18 = vld [vmem:[#allocation9 + $0x18] sm:$0xff]  ;;  %v140_v20 = vld [vmem:[#allocation6 + $0x2] sm:$0x3] }
  0x50   :  { %3380 = vmatprep.subr.bf16.mxu0 %v3757_v0  ;;  %3385 = vmatpush3.bf16.msra.mxu1 %v3910_v9  ;;  %v3930_v19 = vpack.c.bf16 %v107_v18, %v106_v17  ;;  %v100_v21 = vld [vmem:[%s4264_s5] sm:$0xff]  ;;  %v101_v22 = vld [vmem:[%s4264_s5 + $0x8] sm:$0xff]  ;;  %v102_v24 = vld [vmem:[%s4264_s5 + $0x10] sm:$0xff]  ;;  %v442_v53 = vunpack.c.0.s8 %v441_v47 }
  0x51   :  { %3386 = vmatprep.subr.bf16.mxu1 %v3757_v0  ;;  %v3940_v23 = vpack.c.bf16 %v101_v22, %v100_v21  ;;  %v103_v25 = vld [vmem:[%s4264_s5 + $0x18] sm:$0xff]  ;;  %v3964_v29 = vld [vmem:[%s4263_s4] ss:$0 sm:$0xff]  ;;  %v123_v34 = vld [vmem:[#allocation3 + $0x2] sm:$0x3] }
  0x52   :  { %v3950_v26 = vpack.c.bf16 %v103_v25, %v102_v24  ;;  %v131_v36 = vmax.f32 %v123_v34, 0.0  ;;  %v3989_v39 = vld [vmem:[%s4266_s7] ss:$0 sm:$0xff]  ;;  %v3993_v55 = vsub.s32 %v442_v53, %v444_v54  ;;  %v124_v58 = vld [vmem:[#allocation3 + $0x4] sm:$0x3] }
  0x53   :  { %3382 = vmatpush3.bf16.msra.mxu0 %v3913_v11  ;;  %3062 = vmatmul.mubr.msk.f32.vlgmr.msra.gmra.mrb[0].mxu1 %vm215_vm1, %v130_v12  ;;  %v132_v63 = vmax.f32 %v124_v58, 0.0  ;;  %v125_v21 = vld [vmem:[#allocation3 + $0x6] sm:$0x3] }
  0x54   :  { %3072 = vmatprep.mubr.msk.f32.mxu1 %vm3758_vm0, %v3759_v1  ;;  %3392 = vmatprep.subr.bf16.mxu0 %v3757_v0 }
  0x55   :  { %3388 = vmatpush3.bf16.msra.mxu1 %v3926_v16 }
  0x56   :  { %3055 = vmatmul.mubr.msk.f32.vlgmr.msra.gmra.mrb[0].mxu0 %vm141_vm2, %v138_v13  ;;  %3389 = vmatprep.subr.bf16.mxu1 %v3757_v0 }
  0x57   :  { %3083 = vmatprep.mubr.msk.f32.mxu0 %vm3758_vm0, %v3759_v1  ;;  %3394 = vmatpush3.bf16.msra.mxu0 %v3940_v23 }
  0x58   :  { %3395 = vmatprep.subr.bf16.mxu0 %v3757_v0 }
  0x59   :  { %3391 = vmatpush3.bf16.msra.mxu1 %v3930_v19 }
  0x5a   :  { %3398 = vmatprep.subr.bf16.mxu1 %v3757_v0 }
  0x5b   :  { %3397 = vmatpush3.bf16.msra.mxu0 %v3950_v26 }
  0x5c   :  { %3073 = vmatmul.mubr.msk.f32.vlgmr.msra.gmra.mrb[2].mxu1 %vm141_vm2, %v140_v20  ;;  %3407 = vmatprep.subr.bf16.mxu0 %v3757_v0 }
  0x5d   :  { %3400 = vmatpush3.bf16.msra.mxu1 %v3902_v5  ;;  %3094 = vmatprep.mubr.msk.f32.mxu1 %vm3758_vm0, %v3759_v1 }
  0x5e   :  { %3401 = vmatprep.subr.bf16.mxu1 %v3757_v0 }
  0x61   :  { %3403 = vmatpush3.bf16.msra.mxu1 %v3913_v11 }
  0x62   :  { %3404 = vmatprep.subr.bf16.mxu1 %v3757_v0 }
 0x126   :  { %v285_v27 = vpop.f32.mrb[0].mxu1 }
 0x127   :  { %v3063_v28 = vpop.f32.mrb[1].mxu1 }
 0x128   :  { %v133_v28 = vmax.f32 %v125_v21, 0.0 }
 0x129   :  { %v211_v30 = vpop.f32.mrb[0].mxu0 }
 0x12a   :  { %v286_v31 = vadd.f32 %v285_v27, %v211_v30  ;;  %v3056_v32 = vpop.f32.mrb[1].mxu0 }
 0x12c   :  { %v289_v33 = vadd.f32 %v3964_v29, %v286_v31 }
 0x12e   :  { %3567 = vtanh.f32 %v289_v33 }
 0x12f   :  { %v360_v37 = vpop.f32.mrb[2].mxu1 }
 0x130   :  { %v3074_v38 = vpop.f32.mrb[3].mxu1 }
 0x138   :  { %v3568_v35 = vpop.eup %3567 }
 0x139   :  { %3084 = vmatmul.mubr.msk.f32.vlgmr.msra.gmra.mrb[2].mxu0 %vm141_vm2, %v3568_v35  ;;  %3095 = vmatmul.mubr.msk.f32.vlgmr.msra.gmra.mrb[4].mxu1 %vm141_vm2, %v3568_v35 }
 0x13a   :  { %3406 = vmatpush3.bf16.msra.mxu1 %v3910_v9  ;;  %3101 = vmatprep.mubr.msk.f32.mxu1 %vm3758_vm0, %v3759_v1 }
 0x13b   :  { %3409 = vmatpush3.bf16.msra.mxu0 %v3926_v16  ;;  %3413 = vmatprep.subr.bf16.mxu1 %v3757_v0 }
 0x13c   :  { %3410 = vmatprep.subr.bf16.mxu0 %v3757_v0  ;;  %3112 = vmatprep.mubr.msk.f32.mxu0 %vm3758_vm0, %v3759_v1 }
 0x13d   :  { %3102 = vmatmul.mubr.msk.f32.vlgmr.msra.gmra.mrb[6].mxu1 %vm215_vm1, %v131_v36 }
 0x13e   :  { %3415 = vmatpush3.bf16.msra.mxu1 %v3940_v23  ;;  %3123 = vmatprep.mubr.msk.f32.mxu1 %vm3758_vm0, %v3759_v1 }
 0x13f   :  { %3412 = vmatpush3.bf16.msra.mxu0 %v3930_v19  ;;  %3416 = vmatprep.subr.bf16.mxu1 %v3757_v0 }
 0x140   :  { %3419 = vmatprep.subr.bf16.mxu0 %v3757_v0 }
 0x142   :  { %3418 = vmatpush3.bf16.msra.mxu1 %v3950_v26 }
 0x143   :  { %3425 = vmatprep.subr.bf16.mxu1 %v3757_v0 }
 0x20c   :  { %v433_v40 = vpop.f32.mrb[2].mxu0  ;;  %v533_v41 = vpop.f32.mrb[4].mxu1 }
 0x20d   :  { %v434_v42 = vadd.f32 %v433_v40, %v360_v37  ;;  %v3085_v43 = vpop.f32.mrb[3].mxu0  ;;  %v3096_v44 = vpop.f32.mrb[5].mxu1 }
 0x20f   :  { %v437_v45 = vadd.f32 %v3989_v39, %v434_v42 }
 0x210   :  { %v606_v49 = vpop.f32.mrb[6].mxu1 }
 0x211   :  { %3569 = vtanh.f32 %v437_v45  ;;  %v607_v50 = vadd.f32 %v606_v49, %v533_v41  ;;  %v3103_v51 = vpop.f32.mrb[7].mxu1  ;;  %v126_v45 = vld [vmem:[#allocation3 + $0x8] sm:$0x3] }
 0x213   :  { %v610_v52 = vadd.f32 %v3964_v29, %v607_v50  ;;  %v134_v50 = vmax.f32 %v126_v45, 0.0 }
 0x215   :  { %3571 = vtanh.f32 %v610_v52 }
 0x21b   :  { %v3570_v56 = vpop.eup %3569 }
 0x21c   :  { %v446_v57 = vrot.slane %v3570_v56, %v3993_v55  ;;  %3113 = vmatmul.mubr.msk.f32.vlgmr.msra.gmra.mrb[4].mxu0 %vm141_vm2, %v3570_v56 }
 0x21d   :  { %3421 = vmatpush3.bf16.msra.mxu0 %v3902_v5  ;;  %3134 = vmatprep.mubr.msk.f32.mxu0 %vm3758_vm0, %v3759_v1 }
 0x21e   :  { %v447_v59 = vcombine.high %v446_v57, %v446_v57  ;;  %v454_v60 = vrot.slane %v446_v57, %v3993_v55  ;;  %3422 = vmatprep.subr.bf16.mxu0 %v3757_v0 }
 0x21f   :  { %v3572_v61 = vpop.eup %3571 }
 0x220   :  { %v461_v62 = vrot.slane %v447_v59, %v3993_v55  ;;  %465 = vst.msk [vmem:[#allocation2] sm:$0x1] %vm464_vm3, %v454_v60  ;;  %3124 = vmatmul.mubr.msk.f32.vlgmr.msra.gmra.mrb[8].mxu1 %vm141_vm2, %v3572_v61 }
 0x221   :  { %3424 = vmatpush3.bf16.msra.mxu0 %v3913_v11  ;;  %3427 = vmatpush3.bf16.msra.mxu1 %v3910_v9 }
 0x222   :  { %466 = vst.msk [vmem:[#allocation2 + $0x8] sm:$0x1] %vm464_vm3, %v461_v62  ;;  %3141 = vmatprep.mubr.msk.f32.mxu1 %vm3758_vm0, %v3759_v1  ;;  %3428 = vmatprep.subr.bf16.mxu1 %v3757_v0 }
 0x223   :  { %3434 = vmatprep.subr.bf16.mxu0 %v3757_v0 }
 0x224   :  { %3135 = vmatmul.mubr.msk.f32.vlgmr.msra.gmra.mrb[6].mxu0 %vm141_vm2, %v3572_v61  ;;  %3142 = vmatmul.mubr.msk.f32.vlgmr.msra.gmra.mrb[10].mxu1 %vm215_vm1, %v132_v63 }
 0x225   :  { %3430 = vmatpush3.bf16.msra.mxu1 %v3926_v16  ;;  %3436 = vmatpush3.bf16.msra.mxu0 %v3940_v23 }
 0x226   :  { %3431 = vmatprep.subr.bf16.mxu1 %v3757_v0  ;;  %3152 = vmatprep.mubr.msk.f32.mxu1 %vm3758_vm0, %v3759_v1 }
 0x227   :  { %3437 = vmatprep.subr.bf16.mxu0 %v3757_v0  ;;  %3163 = vmatprep.mubr.msk.f32.mxu0 %vm3758_vm0, %v3759_v1 }
 0x229   :  { %3433 = vmatpush3.bf16.msra.mxu1 %v3930_v19  ;;  %3439 = vmatpush3.bf16.msra.mxu0 %v3950_v26 }
 0x22a   :  { %3440 = vmatprep.subr.bf16.mxu1 %v3757_v0  ;;  %3446 = vmatprep.subr.bf16.mxu0 %v3757_v0 }
 0x2ef   :  { %v680_v2 = vpop.f32.mrb[4].mxu0 }
 0x2f0   :  { %v3114_v3 = vpop.f32.mrb[5].mxu0 }
 0x2f3   :  { %v753_v4 = vpop.f32.mrb[8].mxu1 }
 0x2f4   :  { %v754_v6 = vadd.f32 %v753_v4, %v680_v2  ;;  %v3125_v7 = vpop.f32.mrb[9].mxu1  ;;  %v127_v4 = vld [vmem:[#allocation3 + $0xa] sm:$0x3] }
 0x2f6   :  { %v757_v8 = vadd.f32 %v3989_v39, %v754_v6 }
 0x2f7   :  { %v852_v10 = vpop.f32.mrb[6].mxu0  ;;  %v925_v12 = vpop.f32.mrb[10].mxu1 }
 0x2f8   :  { %3573 = vtanh.f32 %v757_v8  ;;  %v3136_v13 = vpop.f32.mrb[7].mxu0  ;;  %v926_v14 = vadd.f32 %v925_v12, %v852_v10  ;;  %v3143_v15 = vpop.f32.mrb[11].mxu1  ;;  %v135_v12 = vmax.f32 %v127_v4, 0.0 }
 0x2fa   :  { %v929_v17 = vadd.f32 %v3964_v29, %v926_v14 }
 0x2fc   :  { %3575 = vtanh.f32 %v929_v17 }
 0x302   :  { %v3574_v18 = vpop.eup %3573 }
 0x303   :  { %v766_v20 = vrot.slane %v3574_v18, %v3993_v55  ;;  %3153 = vmatmul.mubr.msk.f32.vlgmr.msra.gmra.mrb[12].mxu1 %vm141_vm2, %v3574_v18 }
 0x304   :  { %3442 = vmatpush3.bf16.msra.mxu1 %v3902_v5  ;;  %3174 = vmatprep.mubr.msk.f32.mxu1 %vm3758_vm0, %v3759_v1 }
 0x305   :  { %v767_v22 = vcombine.high %v766_v20, %v766_v20  ;;  %v774_v24 = vrot.slane %v766_v20, %v3993_v55  ;;  %3443 = vmatprep.subr.bf16.mxu1 %v3757_v0 }
 0x306   :  { %v3576_v25 = vpop.eup %3575 }
 0x307   :  { %v781_v27 = vrot.slane %v767_v22, %v3993_v55  ;;  %784 = vst.msk [vmem:[#allocation2 + $0x1] sm:$0x1] %vm464_vm3, %v774_v24  ;;  %3164 = vmatmul.mubr.msk.f32.vlgmr.msra.gmra.mrb[8].mxu0 %vm141_vm2, %v3576_v25 }
 0x308   :  { %3445 = vmatpush3.bf16.msra.mxu1 %v3913_v11  ;;  %3448 = vmatpush3.bf16.msra.mxu0 %v3910_v9 }
 0x309   :  { %785 = vst.msk [vmem:[#allocation2 + $0x9] sm:$0x1] %vm464_vm3, %v781_v27  ;;  %3181 = vmatprep.mubr.msk.f32.mxu0 %vm3758_vm0, %v3759_v1  ;;  %3449 = vmatprep.subr.bf16.mxu0 %v3757_v0 }
 0x30a   :  { %3455 = vmatprep.subr.bf16.mxu1 %v3757_v0 }
 0x30b   :  { %3175 = vmatmul.mubr.msk.f32.vlgmr.msra.gmra.mrb[14].mxu1 %vm141_vm2, %v3576_v25  ;;  %3182 = vmatmul.mubr.msk.f32.vlgmr.msra.gmra.mrb[10].mxu0 %vm215_vm1, %v133_v28 }
 0x30c   :  { %3451 = vmatpush3.bf16.msra.mxu0 %v3926_v16  ;;  %3457 = vmatpush3.bf16.msra.mxu1 %v3940_v23 }
 0x30d   :  { %3452 = vmatprep.subr.bf16.mxu0 %v3757_v0  ;;  %3192 = vmatprep.mubr.msk.f32.mxu0 %vm3758_vm0, %v3759_v1 }
 0x30e   :  { %3458 = vmatprep.subr.bf16.mxu1 %v3757_v0  ;;  %3203 = vmatprep.mubr.msk.f32.mxu1 %vm3758_vm0, %v3759_v1 }
 0x310   :  { %3454 = vmatpush3.bf16.msra.mxu0 %v3930_v19  ;;  %3460 = vmatpush3.bf16.msra.mxu1 %v3950_v26 }
 0x311   :  { %3461 = vmatprep.subr.bf16.mxu0 %v3757_v0  ;;  %3467 = vmatprep.subr.bf16.mxu1 %v3757_v0 }
 0x3d6   :  { %v999_v30 = vpop.f32.mrb[12].mxu1 }
 0x3d7   :  { %v3154_v31 = vpop.f32.mrb[13].mxu1 }
 0x3da   :  { %v1072_v32 = vpop.f32.mrb[8].mxu0 }
 0x3db   :  { %v1073_v33 = vadd.f32 %v1072_v32, %v999_v30  ;;  %v3165_v34 = vpop.f32.mrb[9].mxu0  ;;  %v128_v32 = vld [vmem:[#allocation3 + $0xc] sm:$0x3] }
 0x3dd   :  { %v1076_v35 = vadd.f32 %v3989_v39, %v1073_v33 }
 0x3de   :  { %v1171_v36 = vpop.f32.mrb[14].mxu1  ;;  %v1244_v37 = vpop.f32.mrb[10].mxu0 }
 0x3df   :  { %3577 = vtanh.f32 %v1076_v35  ;;  %v3176_v38 = vpop.f32.mrb[15].mxu1  ;;  %v1245_v40 = vadd.f32 %v1244_v37, %v1171_v36  ;;  %v3183_v41 = vpop.f32.mrb[11].mxu0  ;;  %v136_v37 = vmax.f32 %v128_v32, 0.0 }
 0x3e1   :  { %v1248_v42 = vadd.f32 %v3964_v29, %v1245_v40 }
 0x3e3   :  { %3579 = vtanh.f32 %v1248_v42 }
 0x3e9   :  { %v3578_v43 = vpop.eup %3577 }
 0x3ea   :  { %v1085_v44 = vrot.slane %v3578_v43, %v3993_v55  ;;  %3193 = vmatmul.mubr.msk.f32.vlgmr.msra.gmra.mrb[12].mxu0 %vm141_vm2, %v3578_v43 }
 0x3eb   :  { %3463 = vmatpush3.bf16.msra.mxu0 %v3902_v5  ;;  %3214 = vmatprep.mubr.msk.f32.mxu0 %vm3758_vm0, %v3759_v1 }
 0x3ec   :  { %v1086_v46 = vcombine.high %v1085_v44, %v1085_v44  ;;  %v1093_v47 = vrot.slane %v1085_v44, %v3993_v55  ;;  %3464 = vmatprep.subr.bf16.mxu0 %v3757_v0 }
 0x3ed   :  { %v3580_v48 = vpop.eup %3579 }
 0x3ee   :  { %v1100_v49 = vrot.slane %v1086_v46, %v3993_v55  ;;  %1103 = vst.msk [vmem:[#allocation2 + $0x2] sm:$0x1] %vm464_vm3, %v1093_v47  ;;  %3204 = vmatmul.mubr.msk.f32.vlgmr.msra.gmra.mrb[16].mxu1 %vm141_vm2, %v3580_v48 }
 0x3ef   :  { %3466 = vmatpush3.bf16.msra.mxu0 %v3913_v11  ;;  %3469 = vmatpush3.bf16.msra.mxu1 %v3910_v9 }
 0x3f0   :  { %1104 = vst.msk [vmem:[#allocation2 + $0xa] sm:$0x1] %vm464_vm3, %v1100_v49  ;;  %3221 = vmatprep.mubr.msk.f32.mxu1 %vm3758_vm0, %v3759_v1  ;;  %3470 = vmatprep.subr.bf16.mxu1 %v3757_v0 }
 0x3f1   :  { %3476 = vmatprep.subr.bf16.mxu0 %v3757_v0 }
 0x3f2   :  { %3215 = vmatmul.mubr.msk.f32.vlgmr.msra.gmra.mrb[14].mxu0 %vm141_vm2, %v3580_v48  ;;  %3222 = vmatmul.mubr.msk.f32.vlgmr.msra.gmra.mrb[18].mxu1 %vm215_vm1, %v134_v50 }
 0x3f3   :  { %3472 = vmatpush3.bf16.msra.mxu1 %v3926_v16  ;;  %3478 = vmatpush3.bf16.msra.mxu0 %v3940_v23 }
 0x3f4   :  { %3473 = vmatprep.subr.bf16.mxu1 %v3757_v0  ;;  %3232 = vmatprep.mubr.msk.f32.mxu1 %vm3758_vm0, %v3759_v1 }
 0x3f5   :  { %3479 = vmatprep.subr.bf16.mxu0 %v3757_v0  ;;  %3243 = vmatprep.mubr.msk.f32.mxu0 %vm3758_vm0, %v3759_v1 }
 0x3f7   :  { %3475 = vmatpush3.bf16.msra.mxu1 %v3930_v19  ;;  %3481 = vmatpush3.bf16.msra.mxu0 %v3950_v26 }
 0x3f8   :  { %3482 = vmatprep.subr.bf16.mxu1 %v3757_v0  ;;  %3488 = vmatprep.subr.bf16.mxu0 %v3757_v0 }
 0x4bd   :  { %v1318_v51 = vpop.f32.mrb[12].mxu0 }
 0x4be   :  { %v3194_v52 = vpop.f32.mrb[13].mxu0 }
 0x4c1   :  { %v1391_v53 = vpop.f32.mrb[16].mxu1 }
 0x4c2   :  { %v1392_v54 = vadd.f32 %v1391_v53, %v1318_v51  ;;  %v3205_v56 = vpop.f32.mrb[17].mxu1  ;;  %v129_v53 = vld [vmem:[#allocation3 + $0xe] sm:$0x3] }
 0x4c4   :  { %v1395_v57 = vadd.f32 %v3989_v39, %v1392_v54 }
 0x4c5   :  { %v1490_v58 = vpop.f32.mrb[14].mxu0  ;;  %v1563_v59 = vpop.f32.mrb[18].mxu1 }
 0x4c6   :  { %3581 = vtanh.f32 %v1395_v57  ;;  %v3216_v60 = vpop.f32.mrb[15].mxu0  ;;  %v1564_v61 = vadd.f32 %v1563_v59, %v1490_v58  ;;  %v3223_v62 = vpop.f32.mrb[19].mxu1  ;;  %v137_v59 = vmax.f32 %v129_v53, 0.0 }
 0x4c8   :  { %v1567_v63 = vadd.f32 %v3964_v29, %v1564_v61 }
 0x4ca   :  { %3583 = vtanh.f32 %v1567_v63 }
 0x4d0   :  { %v3582_v2 = vpop.eup %3581 }
 0x4d1   :  { %v1404_v3 = vrot.slane %v3582_v2, %v3993_v55  ;;  %3233 = vmatmul.mubr.msk.f32.vlgmr.msra.gmra.mrb[20].mxu1 %vm141_vm2, %v3582_v2 }
 0x4d2   :  { %3484 = vmatpush3.bf16.msra.mxu1 %v3902_v5  ;;  %3254 = vmatprep.mubr.msk.f32.mxu1 %vm3758_vm0, %v3759_v1 }
 0x4d3   :  { %v1405_v6 = vcombine.high %v1404_v3, %v1404_v3  ;;  %v1412_v7 = vrot.slane %v1404_v3, %v3993_v55  ;;  %3485 = vmatprep.subr.bf16.mxu1 %v3757_v0 }
 0x4d4   :  { %v3584_v8 = vpop.eup %3583 }
 0x4d5   :  { %v1419_v10 = vrot.slane %v1405_v6, %v3993_v55  ;;  %1422 = vst.msk [vmem:[#allocation2 + $0x3] sm:$0x1] %vm464_vm3, %v1412_v7  ;;  %3244 = vmatmul.mubr.msk.f32.vlgmr.msra.gmra.mrb[16].mxu0 %vm141_vm2, %v3584_v8 }
 0x4d6   :  { %3487 = vmatpush3.bf16.msra.mxu1 %v3913_v11  ;;  %3490 = vmatpush3.bf16.msra.mxu0 %v3910_v9 }
 0x4d7   :  { %1423 = vst.msk [vmem:[#allocation2 + $0xb] sm:$0x1] %vm464_vm3, %v1419_v10  ;;  %3261 = vmatprep.mubr.msk.f32.mxu0 %vm3758_vm0, %v3759_v1  ;;  %3491 = vmatprep.subr.bf16.mxu0 %v3757_v0 }
 0x4d8   :  { %3497 = vmatprep.subr.bf16.mxu1 %v3757_v0 }
 0x4d9   :  { %3255 = vmatmul.mubr.msk.f32.vlgmr.msra.gmra.mrb[22].mxu1 %vm141_vm2, %v3584_v8  ;;  %3262 = vmatmul.mubr.msk.f32.vlgmr.msra.gmra.mrb[18].mxu0 %vm215_vm1, %v135_v12  ;;  %v2707_v8 = vld [vmem:[%s4267_s8 + $0x8] sm:$0xff]  ;;  %v2708_v12 = vld [vmem:[%s4267_s8 + $0x10] sm:$0xff] }
 0x4da   :  { %3493 = vmatpush3.bf16.msra.mxu0 %v3926_v16  ;;  %3499 = vmatpush3.bf16.msra.mxu1 %v3940_v23 }
 0x4db   :  { %3494 = vmatprep.subr.bf16.mxu0 %v3757_v0  ;;  %3272 = vmatprep.mubr.msk.f32.mxu0 %vm3758_vm0, %v3759_v1 }
 0x4dc   :  { %3500 = vmatprep.subr.bf16.mxu1 %v3757_v0  ;;  %3283 = vmatprep.mubr.msk.f32.mxu1 %vm3758_vm0, %v3759_v1 }
 0x4de   :  { %3496 = vmatpush3.bf16.msra.mxu0 %v3930_v19  ;;  %3502 = vmatpush3.bf16.msra.mxu1 %v3950_v26 }
 0x4df   :  { %3503 = vmatprep.subr.bf16.mxu0 %v3757_v0  ;;  %3509 = vmatprep.subr.bf16.mxu1 %v3757_v0 }
 0x5a4   :  { %v1637_v13 = vpop.f32.mrb[20].mxu1 }
 0x5a5   :  { %v3234_v14 = vpop.f32.mrb[21].mxu1 }
 0x5a8   :  { %v1710_v15 = vpop.f32.mrb[16].mxu0 }
 0x5a9   :  { %v1711_v17 = vadd.f32 %v1710_v15, %v1637_v13  ;;  %v3245_v18 = vpop.f32.mrb[17].mxu0  ;;  %v2709_v13 = vld [vmem:[%s4267_s8 + $0x18] sm:$0xff] }
 0x5aa   :  { %v3549_v14 = vpack.c.bf16 %v2709_v13, %v2708_v12 }
 0x5ab   :  { %v1714_v20 = vadd.f32 %v3989_v39, %v1711_v17 }
 0x5ac   :  { %v1809_v21 = vpop.f32.mrb[22].mxu1  ;;  %v1882_v22 = vpop.f32.mrb[18].mxu0 }
 0x5ad   :  { %3585 = vtanh.f32 %v1714_v20  ;;  %v3256_v24 = vpop.f32.mrb[23].mxu1  ;;  %v1883_v25 = vadd.f32 %v1882_v22, %v1809_v21  ;;  %v3263_v27 = vpop.f32.mrb[19].mxu0 }
 0x5af   :  { %v1886_v28 = vadd.f32 %v3964_v29, %v1883_v25 }
 0x5b1   :  { %3587 = vtanh.f32 %v1886_v28 }
 0x5b7   :  { %v3586_v30 = vpop.eup %3585 }
 0x5b8   :  { %v1723_v31 = vrot.slane %v3586_v30, %v3993_v55  ;;  %3273 = vmatmul.mubr.msk.f32.vlgmr.msra.gmra.mrb[20].mxu0 %vm141_vm2, %v3586_v30 }
 0x5b9   :  { %3505 = vmatpush3.bf16.msra.mxu0 %v3902_v5  ;;  %3294 = vmatprep.mubr.msk.f32.mxu0 %vm3758_vm0, %v3759_v1 }
 0x5ba   :  { %v1724_v33 = vcombine.high %v1723_v31, %v1723_v31  ;;  %v1731_v34 = vrot.slane %v1723_v31, %v3993_v55  ;;  %3506 = vmatprep.subr.bf16.mxu0 %v3757_v0 }
 0x5bb   :  { %v3588_v35 = vpop.eup %3587 }
 0x5bc   :  { %v1738_v36 = vrot.slane %v1724_v33, %v3993_v55  ;;  %1741 = vst.msk [vmem:[#allocation2 + $0x4] sm:$0x1] %vm464_vm3, %v1731_v34  ;;  %3284 = vmatmul.mubr.msk.f32.vlgmr.msra.gmra.mrb[24].mxu1 %vm141_vm2, %v3588_v35 }
 0x5bd   :  { %3508 = vmatpush3.bf16.msra.mxu0 %v3913_v11  ;;  %3511 = vmatpush3.bf16.msra.mxu1 %v3910_v9 }
 0x5be   :  { %1742 = vst.msk [vmem:[#allocation2 + $0xc] sm:$0x1] %vm464_vm3, %v1738_v36  ;;  %3301 = vmatprep.mubr.msk.f32.mxu1 %vm3758_vm0, %v3759_v1  ;;  %3512 = vmatprep.subr.bf16.mxu1 %v3757_v0 }
 0x5bf   :  { %3518 = vmatprep.subr.bf16.mxu0 %v3757_v0 }
 0x5c0   :  { %3295 = vmatmul.mubr.msk.f32.vlgmr.msra.gmra.mrb[22].mxu0 %vm141_vm2, %v3588_v35  ;;  %3302 = vmatmul.mubr.msk.f32.vlgmr.msra.gmra.mrb[26].mxu1 %vm215_vm1, %v136_v37 }
 0x5c1   :  { %3514 = vmatpush3.bf16.msra.mxu1 %v3926_v16  ;;  %3520 = vmatpush3.bf16.msra.mxu0 %v3940_v23 }
 0x5c2   :  { %3515 = vmatprep.subr.bf16.mxu1 %v3757_v0  ;;  %3312 = vmatprep.mubr.msk.f32.mxu1 %vm3758_vm0, %v3759_v1 }
 0x5c3   :  { %3521 = vmatprep.subr.bf16.mxu0 %v3757_v0  ;;  %3323 = vmatprep.mubr.msk.f32.mxu0 %vm3758_vm0, %v3759_v1 }
 0x5c5   :  { %3517 = vmatpush3.bf16.msra.mxu1 %v3930_v19  ;;  %3523 = vmatpush3.bf16.msra.mxu0 %v3950_v26 }
 0x5c6   :  { %3524 = vmatprep.subr.bf16.mxu1 %v3757_v0  ;;  %3530 = vmatprep.subr.bf16.mxu0 %v3757_v0 }
 0x68b   :  { %v1956_v38 = vpop.f32.mrb[20].mxu0 }
 0x68c   :  { %v3274_v40 = vpop.f32.mrb[21].mxu0 }
 0x68f   :  { %v2029_v41 = vpop.f32.mrb[24].mxu1 }
 0x690   :  { %v2030_v42 = vadd.f32 %v2029_v41, %v1956_v38  ;;  %v3285_v43 = vpop.f32.mrb[25].mxu1 }
 0x692   :  { %v2033_v44 = vadd.f32 %v3989_v39, %v2030_v42 }
 0x693   :  { %v2128_v45 = vpop.f32.mrb[22].mxu0  ;;  %v2201_v46 = vpop.f32.mrb[26].mxu1 }
 0x694   :  { %3589 = vtanh.f32 %v2033_v44  ;;  %v3296_v47 = vpop.f32.mrb[23].mxu0  ;;  %v2202_v48 = vadd.f32 %v2201_v46, %v2128_v45  ;;  %v3303_v49 = vpop.f32.mrb[27].mxu1 }
 0x696   :  { %v2205_v50 = vadd.f32 %v3964_v29, %v2202_v48 }
 0x698   :  { %3591 = vtanh.f32 %v2205_v50 }
 0x69e   :  { %v3590_v51 = vpop.eup %3589 }
 0x69f   :  { %v2042_v52 = vrot.slane %v3590_v51, %v3993_v55  ;;  %3313 = vmatmul.mubr.msk.f32.vlgmr.msra.gmra.mrb[28].mxu1 %vm141_vm2, %v3590_v51 }
 0x6a0   :  { %3526 = vmatpush3.bf16.msra.mxu1 %v3902_v5  ;;  %3334 = vmatprep.mubr.msk.f32.mxu1 %vm3758_vm0, %v3759_v1 }
 0x6a1   :  { %v2043_v54 = vcombine.high %v2042_v52, %v2042_v52  ;;  %v2050_v56 = vrot.slane %v2042_v52, %v3993_v55  ;;  %3527 = vmatprep.subr.bf16.mxu1 %v3757_v0 }
 0x6a2   :  { %v3592_v57 = vpop.eup %3591 }
 0x6a3   :  { %v2057_v58 = vrot.slane %v2043_v54, %v3993_v55  ;;  %2060 = vst.msk [vmem:[#allocation2 + $0x5] sm:$0x1] %vm464_vm3, %v2050_v56  ;;  %3324 = vmatmul.mubr.msk.f32.vlgmr.msra.gmra.mrb[24].mxu0 %vm141_vm2, %v3592_v57 }
 0x6a4   :  { %3529 = vmatpush3.bf16.msra.mxu1 %v3913_v11  ;;  %3532 = vmatpush3.bf16.msra.mxu0 %v3910_v9 }
 0x6a5   :  { %2061 = vst.msk [vmem:[#allocation2 + $0xd] sm:$0x1] %vm464_vm3, %v2057_v58  ;;  %3341 = vmatprep.mubr.msk.f32.mxu0 %vm3758_vm0, %v3759_v1  ;;  %3533 = vmatprep.subr.bf16.mxu0 %v3757_v0 }
 0x6a6   :  { %3539 = vmatprep.subr.bf16.mxu1 %v3757_v0 }
 0x6a7   :  { %3335 = vmatmul.mubr.msk.f32.vlgmr.msra.gmra.mrb[30].mxu1 %vm141_vm2, %v3592_v57  ;;  %3342 = vmatmul.mubr.msk.f32.vlgmr.msra.gmra.mrb[26].mxu0 %vm215_vm1, %v137_v59 }
 0x6a8   :  { %3535 = vmatpush3.bf16.msra.mxu0 %v3926_v16  ;;  %3541 = vmatpush3.bf16.msra.mxu1 %v3940_v23 }
 0x6a9   :  { %3536 = vmatprep.subr.bf16.mxu0 %v3757_v0  ;;  %3352 = vmatprep.mubr.msk.f32.mxu0 %vm3758_vm0, %v3759_v1 }
 0x6aa   :  { %3542 = vmatprep.subr.bf16.mxu1 %v3757_v0  ;;  %3363 = vmatprep.mubr.msk.f32.mxu1 %vm3758_vm0, %v3759_v1 }
 0x6ac   :  { %3538 = vmatpush3.bf16.msra.mxu0 %v3930_v19  ;;  %3544 = vmatpush3.bf16.msra.mxu1 %v3950_v26 }
 0x772   :  { %v2275_v5 = vpop.f32.mrb[28].mxu1 }
 0x773   :  { %v3314_v9 = vpop.f32.mrb[29].mxu1 }
 0x776   :  { %v2348_v11 = vpop.f32.mrb[24].mxu0 }
 0x777   :  { %v2349_v16 = vadd.f32 %v2348_v11, %v2275_v5  ;;  %v3325_v60 = vpop.f32.mrb[25].mxu0 }
 0x779   :  { %v2352_v23 = vadd.f32 %v3989_v39, %v2349_v16 }
 0x77a   :  { %v2447_v61 = vpop.f32.mrb[30].mxu1  ;;  %v2520_v62 = vpop.f32.mrb[26].mxu0 }
 0x77b   :  { %3593 = vtanh.f32 %v2352_v23  ;;  %v3336_v63 = vpop.f32.mrb[31].mxu1  ;;  %v2521_v2 = vadd.f32 %v2520_v62, %v2447_v61  ;;  %v3343_v0 = vpop.f32.mrb[27].mxu0 }
 0x77d   :  { %v2524_v3 = vadd.f32 %v3964_v29, %v2521_v2  ;;  %v2706_v29 = vld [vmem:[%s4267_s8] sm:$0xff] }
 0x77e   :  { %v3545_v10 = vpack.c.bf16 %v2707_v8, %v2706_v29 }
 0x77f   :  { %3595 = vtanh.f32 %v2524_v3 }
 0x780   :  { %3546 = vmatprep.subr.bf16.mxu0 %v3545_v10 }
 0x785   :  { %v3594_v1 = vpop.eup %3593 }
 0x786   :  { %v2361_v19 = vrot.slane %v3594_v1, %v3993_v55  ;;  %3353 = vmatmul.mubr.msk.f32.vlgmr.msra.gmra.mrb[28].mxu0 %vm141_vm2, %v3594_v1 }
 0x787   :  { %3548 = vmatpush3.bf16.msra.mxu0 %v3545_v10 }
 0x788   :  { %v2362_v26 = vcombine.high %v2361_v19, %v2361_v19  ;;  %v2369_v4 = vrot.slane %v2361_v19, %v3993_v55  ;;  %3550 = vmatprep.subr.bf16.mxu0 %v3549_v14 }
 0x789   :  { %v3596_v6 = vpop.eup %3595 }
 0x78a   :  { %v2376_v7 = vrot.slane %v2362_v26, %v3993_v55  ;;  %2379 = vst.msk [vmem:[#allocation2 + $0x6] sm:$0x1] %vm464_vm3, %v2369_v4  ;;  %3364 = vmatmul.mubr.msk.f32.vlgmr.msra.gmra.mrb[32].mxu1 %vm141_vm2, %v3596_v6 }
 0x78b   :  { %2701 = vst.msk [vmem:[#allocation12] sm:$0x3] %vm2700_vm4, %v3596_v6  ;;  %3552 = vmatpush3.bf16.msra.mxu0 %v3549_v14 }
 0x78c   :  { %2380 = vst.msk [vmem:[#allocation2 + $0xe] sm:$0x1] %vm464_vm3, %v2376_v7 }
 0x859   :  { %v2594_v15 = vpop.f32.mrb[28].mxu0 }
 0x85a   :  { %v3354_v17 = vpop.f32.mrb[29].mxu0 }
 0x85d   :  { %v2667_v18 = vpop.f32.mrb[32].mxu1 }
 0x85e   :  { %v2668_v20 = vadd.f32 %v2667_v18, %v2594_v15  ;;  %v3365_v21 = vpop.f32.mrb[33].mxu1 }
 0x860   :  { %v2671_v22 = vadd.f32 %v3989_v39, %v2668_v20  ;;  %v2893_v39 = vld [vmem:[%s4268_s9] ss:$0 sm:$0xff]  ;;  %s3761_s9 = smov [#allocation12]  }
 0x861   :  { %s2841_s19 = sshll.u32 %s3761_s9, 4  ;;  %s2842_s19 = int_to_ptr.vmem [resolvable:$true] %s2841_s19 }
 0x862   :  { %3597 = vtanh.f32 %v2671_v22  ;;  %s3695_s21 = scalar_lea.vmem %s2842_s19, 64  ;;  %p3700_p5 = scmp.lt.s32.totalorder %s2842_s19, %s2842_s19 }
 0x863   :  { %p3696_p4 = scmp.ne.s32.totalorder %s2842_s19, %s3695_s21  ;;  %p3701_p6 = scmp.lt.s32.totalorder %s3695_s21, %s3695_s21 }
 0x865   :  { %p3702_p7 = por %p3701_p6, %p3700_p5 }
 0x867   :  { %p3703_p8 = pnand %p3702_p7, %p3696_p4 }
 0x86c   :  { %v3598_v24 = vpop.eup %3597 }
 0x86d   :  { %v2680_v25 = vrot.slane %v3598_v24, %v3993_v55  ;;  %2703 = vst.msk [vmem:[#allocation12 + $0x2] sm:$0x3] %vm2700_vm4, %v3598_v24 }
 0x86f   :  { %v2681_v27 = vcombine.high %v2680_v25, %v2680_v25  ;;  %v2688_v28 = vrot.slane %v2680_v25, %v3993_v55 }
 0x871   :  { %v2695_v30 = vrot.slane %v2681_v27, %v3993_v55  ;;  %2698 = vst.msk [vmem:[#allocation2 + $0x7] sm:$0x1] %vm464_vm3, %v2688_v28 }
 0x873   :  { %2699 = vst.msk [vmem:[#allocation2 + $0xf] sm:$0x1] %vm464_vm3, %v2695_v30 }
 0x878   :  { %v2704_v31 = vld [vmem:[#allocation2] sm:$0xff] }
 0x879   :  { %3374 = vmatprep.mubr.msk.f32.mxu0 %vm141_vm2, %v2704_v31 }
 0x87a   :  { %v2705_v32 = vld [vmem:[#allocation2 + $0x8] sm:$0xff] }
 0x87b   :  { %3375 = vmatmul.mubr.msk.f32.vlgmr.msra.gmra.mrb[30].mxu0 %vm141_vm2, %v2705_v32 }
 0x94e   :  { %v3376_v33 = vpop.f32.mrb[30].mxu0 }
 0x94f   :  { %v2789_v34 = vpop.f32.mrb[31].mxu0  ;;  %v2795_v36 = vadd.f32 %v3376_v33, %v2893_v39 }
 0x950   :  { %v2790_v35 = vadd.f32 %v2893_v39, %v2789_v34 }
 0x951   :  { %v2801_v37 = vsel %vm215_vm1, %v2795_v36, -inf }
 0x952   :  { %v2798_v55 = vsel %vm215_vm1, %v2790_v35, -inf }
 0x953   :  { %2799 = vmax.xlane.f32.xlu0 %v2798_v55 }
 0x957   :  { %2802 = vmax.xlane.f32.xlu0 %v2801_v37 }
 0x9e0   :  { %v2800_v38 = vpop.xlane.xlu0 %2799 }
 0x9e1   :  { %v2804_v40 = vsub.f32 %v2790_v35, %v2800_v38 }
 0x9e3   :  { %v2806_v41 = vmul.f32 1.442695, %v2804_v40 }
 0x9e4   :  { %v2803_v42 = vpop.xlane.xlu0 %2802 }
 0x9e5   :  { %3599 = vpow2.f32 %v2806_v41  ;;  %v2805_v43 = vsub.f32 %v2795_v36, %v2803_v42 }
 0x9e7   :  { %v2808_v44 = vmul.f32 1.442695, %v2805_v43 }
 0x9e9   :  { %3601 = vpow2.f32 %v2808_v44 }
 0x9ef   :  { %v3600_v45 = vpop.eup %3599 }
 0x9f0   :  { %v2810_v46 = vsel %vm215_vm1, %v3600_v45, 0.0 }
 0x9f1   :  { %2811 = vadd.xlane.f32.xlu1 %v2810_v46 }
 0x9f3   :  { %v3602_v47 = vpop.eup %3601 }
 0x9f4   :  { %v2813_v48 = vsel %vm215_vm1, %v3602_v47, 0.0 }
 0x9f5   :  { %2814 = vadd.xlane.f32.xlu1 %v2813_v48 }
 0x9f6   :  { %3706 = shalt.err (!%p3703_p8)
}
 0x9f7   :  { %s3707_s23 = scalar_lea.hbm %s4270_s11, 64 }
 0x9f8   :  { %p3708_p9 = scmp.ne.s32.totalorder %s4270_s11, %s3707_s23  ;;  %p3711_p10 = scmp.lt.u32.totalorder %s3707_s23, %s4270_s11 }
 0x9fa   :  { %p3713_p11 = pnand %p3711_p10, %p3708_p9 }
 0x9fc   :  { %3716 = shalt.err (!%p3713_p11)
}
 0x9fd   :  { %2847 = dma.vmem_to_hbm [thread:$0]  %s2842_s19, 64, %s4270_s11, [#allocation13], %s3751_s29, %s3751_s29, %s3752_s30  }
 0x9fe   :  { %s3762_s28 = smov [#allocation11]  }
 0x9ff   :  { %s2829_s4 = sshll.u32 %s3762_s28, 4  ;;  %s2830_s4 = int_to_ptr.vmem [resolvable:$true] %s2829_s4 }
 0xa00   :  { %s3717_s12 = scalar_lea.vmem %s2830_s4, 256  ;;  %p3722_p13 = scmp.lt.s32.totalorder %s2830_s4, %s2830_s4 }
 0xa01   :  { %p3718_p12 = scmp.ne.s32.totalorder %s2830_s4, %s3717_s12  ;;  %p3723_p0 = scmp.lt.s32.totalorder %s3717_s12, %s3717_s12 }
 0xa03   :  { %p3724_p1 = por %p3723_p0, %p3722_p13 }
 0xa05   :  { %p3725_p2 = pnand %p3724_p1, %p3718_p12 }
 0xa7e   :  { %v2812_v49 = vpop.xlane.xlu1 %2811 }
 0xa7f   :  { %3603 = vlog2.f32 %v2812_v49 }
 0xa82   :  { %v2815_v50 = vpop.xlane.xlu1 %2814 }
 0xa83   :  { %3605 = vlog2.f32 %v2815_v50 }
 0xa89   :  { %v3604_v51 = vpop.eup %3603 }
 0xa8a   :  { %v2817_v52 = vmul.f32 0.6931472, %v3604_v51 }
 0xa8c   :  { %v2820_v53 = vsub.f32 %v2804_v40, %v2817_v52 }
 0xa8d   :  { %v3606_v54 = vpop.eup %3605 }
 0xa8e   :  { %2822 = vst.msk [vmem:[#allocation11] sm:$0xff] %vm215_vm1, %v2820_v53  ;;  %v2819_v56 = vmul.f32 0.6931472, %v3606_v54 }
 0xa90   :  { %v2821_v57 = vsub.f32 %v2805_v43, %v2819_v56 }
 0xa92   :  { %2823 = vst.msk [vmem:[#allocation11 + $0x8] sm:$0xff] %vm215_vm1, %v2821_v57 }
 0xa93   :  { %3728 = shalt.err (!%p3725_p2)
}
 0xa94   :  { %s3729_s30 = scalar_lea.hbm %s4269_s10, 256 }
 0xa95   :  { %p3730_p3 = scmp.ne.s32.totalorder %s4269_s10, %s3729_s30  ;;  %p3733_p4 = scmp.lt.u32.totalorder %s3729_s30, %s4269_s10 }
 0xa97   :  { %p3735_p5 = pnand %p3733_p4, %p3730_p3 }
 0xa99   :  { %3738 = shalt.err (!%p3735_p5)
}
 0xa9a   :  { %2835 = dma.vmem_to_hbm [thread:$0]  %s2830_s4, 256, %s4269_s10, [#allocation5], %s3754_s0, %s3754_s0, %s3755_s20  }
 0xa9b   :  { %3745 = dma.done.wait [#allocation5], 256  }
 0xa9c   :  { %3746 = vsyncadd [#allocation5], 4294967040 }
 0xa9d   :  { %3747 = dma.done.wait [#allocation13], 64  }
 0xa9e   :  { %3748 = vsyncadd [#allocation13], 4294967232 }
 0xa9f   :  { %2854 = vsyncpa [#allocation4], 1 }
 0xaa0   :  { %2855 = vsyncpa [#allocation7], 1 }
 0xaa1   :  { %2856 = vsyncpa [#allocation10], 1 }
 0xaa2   :  { %2857 = vsyncpa [#allocation5], 1 }
 0xaa3   :  { %2858 = vsyncpa [#allocation13], 1 }

</bundles_post_ra>
